<compile_context>
chip_gen: v6e
topology: v6e:2x2x1
jax: 0.10.0
libtpu: 0.0.40
codegen_flags: <defaults>
</compile_context>

<pallas_src>
import functools

import jax
import jax.numpy as jnp
from jax.experimental import pallas as pl
from jax.experimental.pallas import tpu as pltpu

LEAKY_SLOPE = 0.01          # torch.nn.LeakyReLU default negative_slope
NEG_FILL = -1e30            # bias fill for padded action lanes (exp -> 0)
LANE = 128                  # TPU lane width
MAX_TB = 512                # max batch rows per grid step (amortizes ~0.35us/step)
XLA_FASTPATH_MAX_B = 8      # tiny batches: pallas_call overhead > actual work


def _round_up(n, m):
    return ((n + m - 1) // m) * m


def _leaky(v):
    return jnp.where(v >= 0, v, LEAKY_SLOPE * v)


def _qnet_kernel(x_ref, w1_ref, b1_ref, w2_ref, b2_ref, w3_ref, b3_ref, o_ref):
    """Fused MLP forward on one [TB, S] batch tile. Weights stay VMEM-resident."""
    x = x_ref[...]                                                    # [TB, S] f32

    # fc1 + LeakyReLU  (bf16 operands into the MXU, f32 accumulate)
    h1 = jnp.dot(x.astype(jnp.bfloat16), w1_ref[...],
                 preferred_element_type=jnp.float32) + b1_ref[...]    # [TB, SP]
    h1 = _leaky(h1)

    # fc2 + LeakyReLU
    h2 = jnp.dot(h1.astype(jnp.bfloat16), w2_ref[...],
                 preferred_element_type=jnp.float32) + b2_ref[...]    # [TB, SP]
    h2 = _leaky(h2)

    # fc3 + softmax over the action axis (padded lanes carry -1e30 bias -> exp=0)
    logits = jnp.dot(h2.astype(jnp.bfloat16), w3_ref[...],
                     preferred_element_type=jnp.float32) + b3_ref[...]  # [TB, AP]
    m = jnp.max(logits, axis=-1, keepdims=True)
    e = jnp.exp(logits - m)
    denom = jnp.sum(e, axis=-1, keepdims=True)
    o_ref[...] = e / denom        # exact divide: keeps softmax accurate + sum==1


def init_params(key, state_space, action_space):
    """Deterministic synthetic init, torch Linear weight layout [out, in]."""
    ks = jax.random.split(key, 6)

    def lin(kw, kb, fan_in, fan_out):
        bound = 1.0 / jnp.sqrt(fan_in)
        w = jax.random.uniform(kw, (fan_out, fan_in), jnp.float32, -bound, bound)
        b = jax.random.uniform(kb, (fan_out,), jnp.float32, -bound, bound)
        return w, b

    w1, b1 = lin(ks[0], ks[1], state_space, state_space)
    w2, b2 = lin(ks[2], ks[3], state_space, state_space)
    w3, b3 = lin(ks[4], ks[5], state_space, action_space)
    return {"w1": w1, "b1": b1, "w2": w2, "b2": b2, "w3": w3, "b3": b3}


def prepare_params(params, state_space, action_space):
    """One-time prep: transpose torch [out,in] -> [in,out], pad OUTPUT dims to
    lane-dense 128 multiples, cast weights to bf16.

    The fc1 input (contraction) dim is NOT padded -> x stays [B, state_space].
    Padded output lanes of fc1/fc2 get zero weights/bias (LeakyReLU(0)=0 and the
    matching padded rows of the next layer are zero, so they are inert).  Padded
    action lanes of fc3 get zero weights and a -1e30 bias so softmax gives 0.
    """
    S = state_space
    SP = _round_up(state_space, LANE)
    AP = _round_up(action_space, LANE)
    f32, bf16 = jnp.float32, jnp.bfloat16

    w1 = jnp.zeros((S, SP), f32).at[:, :S].set(params["w1"].astype(f32).T).astype(bf16)
    b1 = jnp.zeros((1, SP), f32).at[0, :S].set(params["b1"].astype(f32))

    w2 = jnp.zeros((SP, SP), f32).at[:S, :S].set(params["w2"].astype(f32).T).astype(bf16)
    b2 = jnp.zeros((1, SP), f32).at[0, :S].set(params["b2"].astype(f32))

    w3 = jnp.zeros((SP, AP), f32).at[:S, :action_space].set(
        params["w3"].astype(f32).T).astype(bf16)
    b3 = jnp.full((1, AP), NEG_FILL, f32).at[0, :action_space].set(
        params["b3"].astype(f32))

    return {
        "w1": w1, "b1": b1, "w2": w2, "b2": b2, "w3": w3, "b3": b3,
        "state_space": state_space, "action_space": action_space,
        "SP": SP, "AP": AP,
    }


@functools.partial(jax.jit, static_argnames=("TB", "grid_len"))
def _qnet_call(xp, w1, b1, w2, b2, w3, b3, *, TB, grid_len):
    B_pad, S = xp.shape
    SP = w2.shape[0]
    AP = w3.shape[1]
    full = lambda i: (0, 0)
    return pl.pallas_call(
        _qnet_kernel,
        out_shape=jax.ShapeDtypeStruct((B_pad, AP), jnp.float32),
        grid=(grid_len,),
        in_specs=[
            pl.BlockSpec((TB, S), lambda i: (i, 0)),    # x tile, unpadded K dim
            pl.BlockSpec((S, SP), full),                # w1 bf16 (VMEM-resident)
            pl.BlockSpec((1, SP), full),                # b1 f32
            pl.BlockSpec((SP, SP), full),               # w2 bf16
            pl.BlockSpec((1, SP), full),                # b2 f32
            pl.BlockSpec((SP, AP), full),               # w3 bf16
            pl.BlockSpec((1, AP), full),                # b3 f32 (-1e30 pad lanes)
        ],
        out_specs=pl.BlockSpec((TB, AP), lambda i: (i, 0)),
        compiler_params=pltpu.CompilerParams(
            dimension_semantics=("parallel",)),         # v7x: batch over 2 TCs
    )(xp, w1, b1, w2, b2, w3, b3)


def _xla_forward(x, prepped):
    """Tiny-batch fast path: same bf16/pad numerics as the kernel, plain XLA."""
    h1 = _leaky(jnp.dot(x.astype(jnp.bfloat16), prepped["w1"],
                        preferred_element_type=jnp.float32) + prepped["b1"])
    h2 = _leaky(jnp.dot(h1.astype(jnp.bfloat16), prepped["w2"],
                        preferred_element_type=jnp.float32) + prepped["b2"])
    logits = jnp.dot(h2.astype(jnp.bfloat16), prepped["w3"],
                     preferred_element_type=jnp.float32) + prepped["b3"]
    return jax.nn.softmax(logits, axis=-1)


def qnetwork_forward(x, prepped):
    """x: [S] or [B, S] float state(s). Returns [A] or [B, A] softmax distributions."""
    squeeze = (x.ndim == 1)
    if squeeze:
        x = x[None, :]
    B, S = x.shape
    assert S == prepped["state_space"]
    A = prepped["action_space"]

    # Latency path: a 64x64x64 MLP step is ~ns of work; skip pallas_call overhead.
    if B <= XLA_FASTPATH_MAX_B:
        out = _xla_forward(x.astype(jnp.float32), prepped)[:, :A]
        return out[0] if squeeze else out

    # Adaptive batch tiling: big lane/sublane-dense tiles, >=2 grid steps so a
    # v7x megacore can split the batch (harmless single extra step elsewhere).
    B8 = _round_up(B, 8)
    grid_len = -(-B8 // MAX_TB)
    if B8 >= 16:
        grid_len = max(grid_len, 2)
    TB = _round_up(-(-B8 // grid_len), 8)
    B_pad = TB * grid_len

    xf = x.astype(jnp.float32)
    xp = xf if B_pad == B else jnp.zeros((B_pad, S), jnp.float32).at[:B].set(xf)

    out = _qnet_call(
        xp, prepped["w1"], prepped["b1"], prepped["w2"], prepped["b2"],
        prepped["w3"], prepped["b3"], TB=TB, grid_len=grid_len)

    out = out[:B, :A]
    return out[0] if squeeze else out


def _reference_forward(x, params):
    """Pure-JAX f32 reference mirroring the torch forward (single or batched)."""
    h1 = _leaky(x @ params["w1"].T + params["b1"])
    h2 = _leaky(h1 @ params["w2"].T + params["b2"])
    logits = h2 @ params["w3"].T + params["b3"]
    return jax.nn.softmax(logits, axis=-1)   # == torch Softmax(dim=0) for 1-D x


if __name__ == "__main__":
    # Module-consistent small sizes: 8x8 board -> state_space = 64, actions 1..7.
    STATE_SPACE = 64
    ACTION_SPACE = 7
    BATCH = 16          # big enough to exercise the Pallas path (2 grid steps)

    key = jax.random.PRNGKey(0)
    k_params, k_x = jax.random.split(key)
    params = init_params(k_params, STATE_SPACE, ACTION_SPACE)
    prepped = prepare_params(params, STATE_SPACE, ACTION_SPACE)

    xb = jax.random.normal(k_x, (BATCH, STATE_SPACE), jnp.float32)

    # Batched path through the Pallas kernel (bf16 matmul operands -> 2e-2 tol).
    out_b = jax.block_until_ready(qnetwork_forward(xb, prepped))
    ref_b = _reference_forward(xb, params)
    assert out_b.shape == (BATCH, ACTION_SPACE)
    assert jnp.allclose(out_b, ref_b, atol=2e-2, rtol=2e-2), (out_b, ref_b)
    assert jnp.allclose(jnp.sum(out_b, axis=-1), 1.0, atol=1e-4)

    # Ragged batch (exercises batch-padding + tile logic).
    xr = xb[:13]
    out_r = jax.block_until_ready(qnetwork_forward(xr, prepped))
    ref_r = _reference_forward(xr, params)
    assert out_r.shape == (13, ACTION_SPACE)
    assert jnp.allclose(out_r, ref_r, atol=2e-2, rtol=2e-2), (out_r, ref_r)
    assert jnp.allclose(jnp.sum(out_r, axis=-1), 1.0, atol=1e-4)

    # Single-state path (torch-style 1-D usage; XLA fast path, same weights).
    x1 = xb[0]
    out_1 = jax.block_until_ready(qnetwork_forward(x1, prepped))
    ref_1 = _reference_forward(x1, params)
    assert out_1.shape == (ACTION_SPACE,)
    assert jnp.allclose(out_1, ref_1, atol=2e-2, rtol=2e-2), (out_1, ref_1)
    assert jnp.allclose(jnp.sum(out_1), 1.0, atol=1e-4)

    print("KERNEL_OK")
</pallas_src>

<mosaic_0001>
module attributes {stable_mosaic.version = 11 : i64} {
  func.func @_qnet_kernel(%arg0: i32, %arg1: memref<8x64xf32, #tpu.memory_space<vmem>>, %arg2: memref<64x128xbf16, #tpu.memory_space<vmem>>, %arg3: memref<1x128xf32, #tpu.memory_space<vmem>>, %arg4: memref<128x128xbf16, #tpu.memory_space<vmem>>, %arg5: memref<1x128xf32, #tpu.memory_space<vmem>>, %arg6: memref<128x128xbf16, #tpu.memory_space<vmem>>, %arg7: memref<1x128xf32, #tpu.memory_space<vmem>>, %arg8: memref<8x128xf32, #tpu.memory_space<vmem>>) attributes {dimension_semantics = [#tpu.dimension_semantics<parallel>], iteration_bounds = array<i64: 2>, scalar_prefetch = 0 : i64, scratch_operands = 0 : i64, tpu.core_type = #tpu.core_type<tc>, window_params = [{transform_indices = @transform_0, window_bounds = array<i64: 8, 64>}, {pipeline_mode = #tpu.pipeline_mode<synchronous>, transform_indices = @transform_1, window_bounds = array<i64: 64, 128>}, {pipeline_mode = #tpu.pipeline_mode<synchronous>, transform_indices = @transform_2, window_bounds = array<i64: 1, 128>}, {pipeline_mode = #tpu.pipeline_mode<synchronous>, transform_indices = @transform_3, window_bounds = array<i64: 128, 128>}, {pipeline_mode = #tpu.pipeline_mode<synchronous>, transform_indices = @transform_4, window_bounds = array<i64: 1, 128>}, {pipeline_mode = #tpu.pipeline_mode<synchronous>, transform_indices = @transform_5, window_bounds = array<i64: 128, 128>}, {pipeline_mode = #tpu.pipeline_mode<synchronous>, transform_indices = @transform_6, window_bounds = array<i64: 1, 128>}, {transform_indices = @transform_7, window_bounds = array<i64: 8, 128>}]} {
    %c0 = arith.constant 0 : index
    %c0_0 = arith.constant 0 : index
    %0 = vector.load %arg1[%c0, %c0_0] : memref<8x64xf32, #tpu.memory_space<vmem>>, vector<8x64xf32>
    %1 = arith.truncf %0 : vector<8x64xf32> to vector<8x64xbf16>
    %c0_1 = arith.constant 0 : index
    %c0_2 = arith.constant 0 : index
    %2 = vector.load %arg2[%c0_1, %c0_2] : memref<64x128xbf16, #tpu.memory_space<vmem>>, vector<64x128xbf16>
    %cst = arith.constant dense<0.000000e+00> : vector<8x128xf32>
    %3 = tpu.matmul %1, %2, %cst {dimension_numbers = #tpu.dot_dimension_numbers<[1], [0], [0], [1], [0, 0, 1, 1], [], []>} : vector<8x64xbf16>, vector<64x128xbf16>, vector<8x128xf32> -> vector<8x128xf32>
    %c0_3 = arith.constant 0 : index
    %c0_4 = arith.constant 0 : index
    %4 = vector.load %arg3[%c0_3, %c0_4] : memref<1x128xf32, #tpu.memory_space<vmem>>, vector<1x128xf32>
    %5 = vector.broadcast %4 : vector<1x128xf32> to vector<8x128xf32>
    %6 = arith.addf %3, %5 : vector<8x128xf32>
    %cst_5 = arith.constant 0.000000e+00 : f32
    %7 = vector.broadcast %cst_5 : f32 to vector<8x128xf32>
    %8 = arith.cmpf oge, %6, %7 : vector<8x128xf32>
    %cst_6 = arith.constant 0.00999999977 : f32
    %9 = vector.broadcast %cst_6 : f32 to vector<8x128xf32>
    %10 = arith.mulf %9, %6 : vector<8x128xf32>
    %11 = arith.select %8, %6, %10 : vector<8x128xi1>, vector<8x128xf32>
    %12 = arith.truncf %11 : vector<8x128xf32> to vector<8x128xbf16>
    %c0_7 = arith.constant 0 : index
    %c0_8 = arith.constant 0 : index
    %13 = vector.load %arg4[%c0_7, %c0_8] : memref<128x128xbf16, #tpu.memory_space<vmem>>, vector<128x128xbf16>
    %cst_9 = arith.constant dense<0.000000e+00> : vector<8x128xf32>
    %14 = tpu.matmul %12, %13, %cst_9 {dimension_numbers = #tpu.dot_dimension_numbers<[1], [0], [0], [1], [0, 0, 1, 1], [], []>} : vector<8x128xbf16>, vector<128x128xbf16>, vector<8x128xf32> -> vector<8x128xf32>
    %c0_10 = arith.constant 0 : index
    %c0_11 = arith.constant 0 : index
    %15 = vector.load %arg5[%c0_10, %c0_11] : memref<1x128xf32, #tpu.memory_space<vmem>>, vector<1x128xf32>
    %16 = vector.broadcast %15 : vector<1x128xf32> to vector<8x128xf32>
    %17 = arith.addf %14, %16 : vector<8x128xf32>
    %cst_12 = arith.constant 0.000000e+00 : f32
    %18 = vector.broadcast %cst_12 : f32 to vector<8x128xf32>
    %19 = arith.cmpf oge, %17, %18 : vector<8x128xf32>
    %cst_13 = arith.constant 0.00999999977 : f32
    %20 = vector.broadcast %cst_13 : f32 to vector<8x128xf32>
    %21 = arith.mulf %20, %17 : vector<8x128xf32>
    %22 = arith.select %19, %17, %21 : vector<8x128xi1>, vector<8x128xf32>
    %23 = arith.truncf %22 : vector<8x128xf32> to vector<8x128xbf16>
    %c0_14 = arith.constant 0 : index
    %c0_15 = arith.constant 0 : index
    %24 = vector.load %arg6[%c0_14, %c0_15] : memref<128x128xbf16, #tpu.memory_space<vmem>>, vector<128x128xbf16>
    %cst_16 = arith.constant dense<0.000000e+00> : vector<8x128xf32>
    %25 = tpu.matmul %23, %24, %cst_16 {dimension_numbers = #tpu.dot_dimension_numbers<[1], [0], [0], [1], [0, 0, 1, 1], [], []>} : vector<8x128xbf16>, vector<128x128xbf16>, vector<8x128xf32> -> vector<8x128xf32>
    %c0_17 = arith.constant 0 : index
    %c0_18 = arith.constant 0 : index
    %26 = vector.load %arg7[%c0_17, %c0_18] : memref<1x128xf32, #tpu.memory_space<vmem>>, vector<1x128xf32>
    %27 = vector.broadcast %26 : vector<1x128xf32> to vector<8x128xf32>
    %28 = arith.addf %25, %27 : vector<8x128xf32>
    %cst_19 = arith.constant dense<0xFF800000> : vector<8xf32>
    %29 = vector.multi_reduction <maximumf>, %28, %cst_19 [1] : vector<8x128xf32> to vector<8xf32>
    %30 = vector.shape_cast %29 : vector<8xf32> to vector<8x1xf32>
    %31 = vector.broadcast %30 : vector<8x1xf32> to vector<8x128xf32>
    %32 = arith.subf %28, %31 : vector<8x128xf32>
    %33 = math.exp %32 : vector<8x128xf32>
    %cst_20 = arith.constant dense<0.000000e+00> : vector<8xf32>
    %34 = vector.multi_reduction <add>, %33, %cst_20 [1] : vector<8x128xf32> to vector<8xf32>
    %35 = vector.shape_cast %34 : vector<8xf32> to vector<8x1xf32>
    %36 = vector.broadcast %35 : vector<8x1xf32> to vector<8x128xf32>
    %37 = arith.divf %33, %36 : vector<8x128xf32>
    %c0_21 = arith.constant 0 : index
    %c0_22 = arith.constant 0 : index
    %38 = vector.load %arg8[%c0_21, %c0_22] : memref<8x128xf32, #tpu.memory_space<vmem>>, vector<8x128xf32>
    tpu.vector_store %arg8[%c0_21, %c0_22], %37 {strides = array<i32>} : memref<8x128xf32, #tpu.memory_space<vmem>>, vector<8x128xf32>,
    return
  }
  func.func @transform_0(%arg0: i32) -> (i32, i32) {
    %c0_i32 = arith.constant 0 : i32
    %c0_i32_0 = arith.constant 0 : i32
    return %arg0, %c0_i32 : i32, i32
  }
  func.func @transform_1(%arg0: i32) -> (i32, i32) {
    %c0_i32 = arith.constant 0 : i32
    %c0_i32_0 = arith.constant 0 : i32
    %c0_i32_1 = arith.constant 0 : i32
    return %c0_i32, %c0_i32_0 : i32, i32
  }
  func.func @transform_2(%arg0: i32) -> (i32, i32) {
    %c0_i32 = arith.constant 0 : i32
    %c0_i32_0 = arith.constant 0 : i32
    %c0_i32_1 = arith.constant 0 : i32
    return %c0_i32, %c0_i32_0 : i32, i32
  }
  func.func @transform_3(%arg0: i32) -> (i32, i32) {
    %c0_i32 = arith.constant 0 : i32
    %c0_i32_0 = arith.constant 0 : i32
    %c0_i32_1 = arith.constant 0 : i32
    return %c0_i32, %c0_i32_0 : i32, i32
  }
  func.func @transform_4(%arg0: i32) -> (i32, i32) {
    %c0_i32 = arith.constant 0 : i32
    %c0_i32_0 = arith.constant 0 : i32
    %c0_i32_1 = arith.constant 0 : i32
    return %c0_i32, %c0_i32_0 : i32, i32
  }
  func.func @transform_5(%arg0: i32) -> (i32, i32) {
    %c0_i32 = arith.constant 0 : i32
    %c0_i32_0 = arith.constant 0 : i32
    %c0_i32_1 = arith.constant 0 : i32
    return %c0_i32, %c0_i32_0 : i32, i32
  }
  func.func @transform_6(%arg0: i32) -> (i32, i32) {
    %c0_i32 = arith.constant 0 : i32
    %c0_i32_0 = arith.constant 0 : i32
    %c0_i32_1 = arith.constant 0 : i32
    return %c0_i32, %c0_i32_0 : i32, i32
  }
  func.func @transform_7(%arg0: i32) -> (i32, i32) {
    %c0_i32 = arith.constant 0 : i32
    %c0_i32_0 = arith.constant 0 : i32
    return %arg0, %c0_i32 : i32, i32
  }
}

</mosaic_0001>

<bundles_post_ra>
// kernel: _qnet_call.1
= control target key start
LH: loop header
LB: loop body
LE: loop exit
PB: predicated region body
PF: predicated region fallthrough
CT: control target
= control target key end

     0   :  { %s1444_s0 = inlined_call_operand.hbm [shape: f32[16,64], index: 0, kind: input, shape index: {}]   ;;  %s1445_s1 = inlined_call_operand.hbm [shape: bf16[64,128], index: 1, kind: input, shape index: {}]   ;;  %s1446_s2 = inlined_call_operand.vmem [shape: f32[1,128], index: 2, kind: input, shape index: {}]   ;;  %s1447_s3 = inlined_call_operand.hbm [shape: bf16[128,128], index: 3, kind: input, shape index: {}]   ;;  %s1448_s4 = inlined_call_operand.vmem [shape: f32[1,128], index: 4, kind: input, shape index: {}]   ;;  %s1449_s5 = inlined_call_operand.hbm [shape: bf16[128,128], index: 5, kind: input, shape index: {}]   ;;  %s1450_s6 = inlined_call_operand.vmem [shape: f32[1,128], index: 6, kind: input, shape index: {}]   ;;  %s1451_s7 = inlined_call_operand.hbm [shape: f32[16,128], index: 7, kind: output, shape index: {}]  }
   0x1   :  { %1456 = sst [smem:[#allocation15_spill]] %s1445_s1 }
   0x2   :  { %1457 = sst [smem:[#allocation16_spill]] %s1447_s3 }
   0x3   :  { %12 = vsyncpa [#allocation3], 0 }
   0x4   :  { %14 = vsyncpa [#allocation3 + $0x1], 0 }
   0x5   :  { %15 = vsyncpa [#allocation6], 0 }
   0x6   :  { %16 = vsyncpa [#allocation9], 0 }
   0x7   :  { %17 = vsyncpa [#allocation4], 0 }
   0x8   :  { %19 = vsyncpa [#allocation4 + $0x1], 0  ;;  %s1228_s24 = smov 0   ;;  %s1230_s25 = smov 0  }
   0x9   :  { %s1232_s26 = smov 0   ;;  %s1234_s27 = smov 0  }
   0xa LB: > { %s1249_s28 = sadd.s32 4294967295, %s1177_s27   ;;  %s777_s29 = sadd.s32 4294967294, %s1177_s27   ;;  %s1177_s27 = sphi %s1234_s27, %s1479_s27   ;;  %s1173_s26 = sphi %s1232_s26, %s1478_s26   ;;  %s1169_s25 = sphi %s1230_s25, %s1477_s25   ;;  %s1165_s24 = sphi %s1228_s24, %s1476_s24  }
   0xb   : > { %p45_p0 = scmp.ne.s32.totalorder %s1169_s25, %s1165_s24  ;;  %p1452_p1 = scmp.eq.s32.totalorder %s1249_s28, 0 }
   0xc   : > { %p201_p3 = scmp.eq.s32.totalorder %s777_s29, 1  ;;  %p778_p5 = scmp.ge.s32.totalorder %s1177_s27, 1 }
   0xd   : > { %p1258_p4 = por %p1452_p1, %p45_p0  ;;  %p208_p7 = scmp.lt.s32.totalorder %s1177_s27, 3 }
   0xe   : > { %p1263_p6 = por %p201_p3, %p45_p0  ;;  %s1179_s10 = smov [#allocation5]  }
   0xf   : > { %s1458_s30 = scalar_select %p1258_p4, 1, 0 }
  0x10   : > { %s1459_s8 = scalar_select %p1263_p6, 1, 0 }
  0x11   : > { %p1268_p8 = pnand %p778_p5, %p208_p7  ;;  %s220_s11 = sshll.u32 %s1179_s10, 4  ;;  %s221_s11 = int_to_ptr.vmem [resolvable:$true] %s220_s11 }
  0x12   : > { %s1180_s13 = smov [#allocation7]   ;;  %s1181_s15 = smov [#allocation8]  }
  0x13   : > { %s1460_s9 = scalar_select %p1268_p8, 1, 0 }
  0x14   : > { %p910_p9 = pneg %p1268_p8  ;;  %s236_s14 = sshll.u32 %s1180_s13, 4  ;;  %s237_s14 = int_to_ptr.vmem [resolvable:$true] %s236_s14 }
  0x15   : > { %s252_s16 = sshll.u32 %s1181_s15, 4  ;;  %s1010_s17 = scalar_lea.vmem %s221_s11, 512  ;;  %s253_s16 = int_to_ptr.vmem [resolvable:$true] %s252_s16 }
  0x16   : > { %p1277_p11 = pnand %p910_p9, %p1452_p1  ;;  %p1011_p13 = scmp.ne.s32.totalorder %s221_s11, %s1010_s17 }
  0x17   : > { %p1018_p5 = scmp.lt.s32.totalorder %s221_s11, %s221_s11  ;;  %p1019_p7 = scmp.lt.s32.totalorder %s1010_s17, %s1010_s17 }
  0x18   : > { %p1001_p12 = pneg %p1277_p11 }
  0x19   : > { %p1020_p9 = por %p1019_p7, %p1018_p5 }
  0x1a   : > { %p1013_p0 = pnand %p1011_p13, %p1001_p12 }
  0x1c   : > { %p1014_p3 = pneg %p1013_p0 }
  0x1e   : > { %p1021_p10 = pnand %p1020_p9, %p1014_p3 }
  0x20   : > { %1024 = shalt.err (!%p1021_p10)
}
  0x21   : > { %s1182_s18 = smov 64   ;;  %s1183_s19 = smov 4  }
  0x22   : > { %s1462_s1 = sld [smem:[#allocation15_spill]]  ;;  %s1036_s22 = scalar_lea.vmem %s237_s14, 1024 }
  0x23   : > { %p1037_p1 = scmp.ne.s32.totalorder %s237_s14, %s1036_s22  ;;  %p1044_p2 = scmp.lt.s32.totalorder %s237_s14, %s237_s14 }
  0x24   : > { %p1045_p6 = scmp.lt.s32.totalorder %s1036_s22, %s1036_s22 }
  0x25   : > { %p1039_p13 = pnand %p1037_p1, %p1001_p12 }
  0x26   : > { %p1046_p5 = por %p1045_p6, %p1044_p2 }
  0x27   : > { %p1040_p0 = pneg %p1039_p13 }
  0x28   : > { %913 = dma.hbm_to_vmem [thread:$0]  (!%p1277_p11), %s1462_s1, 512, %s221_s11, [#allocation6], %s1182_s18, %s1182_s18, %s1183_s19  }
  0x29   : > { %p1047_p3 = pnand %p1046_p5, %p1040_p0 }
  0x2b   : > { %1050 = shalt.err (!%p1047_p3)
}
  0x2c   : > { %s1463_s3 = sld [smem:[#allocation16_spill]]  ;;  %s1062_s10 = scalar_lea.vmem %s253_s16, 1024 }
  0x2d   : > { %p1063_p10 = scmp.ne.s32.totalorder %s253_s16, %s1062_s10  ;;  %p1070_p9 = scmp.lt.s32.totalorder %s253_s16, %s253_s16 }
  0x2e   : > { %p1071_p13 = scmp.lt.s32.totalorder %s1062_s10, %s1062_s10 }
  0x2f   : > { %p1065_p7 = pnand %p1063_p10, %p1001_p12 }
  0x30   : > { %p1072_p4 = por %p1071_p13, %p1070_p9 }
  0x31   : > { %p1066_p1 = pneg %p1065_p7 }
  0x32   : > { %916 = dma.hbm_to_vmem [thread:$0]  (!%p1277_p11), %s1463_s3, 1024, %s237_s14, [#allocation6], %s1182_s18, %s1182_s18, %s1183_s19  }
  0x33   : > { %p1073_p2 = pnand %p1072_p4, %p1066_p1 }
  0x35   : > { %1076 = shalt.err (!%p1073_p2)
}
  0x36   : > { %919 = dma.hbm_to_vmem [thread:$0]  (!%p1277_p11), %s1449_s5, 1024, %s253_s16, [#allocation9], %s1182_s18, %s1182_s18, %s1183_s19  }
  0x37   : > { %s1308_s14 = sadd.s32 1, %s1177_s27   ;;  %s32_s12 = sadd.s32 1, %s1173_s26 }
  0x38   : > { %s29_s15 = ssub.s32 %s1177_s27, %s1308_s14  ;;  %p39_p6 = scmp.ne.s32.totalorder %s1173_s26, %s1169_s25 }
  0x39   : > { %p30_p4 = scmp.eq.s32.totalorder %s29_s15, 0  ;;  %p40_p12 = scmp.eq.s32.totalorder %s1177_s27, 0 }
  0x3a   : > { %p931_p0 = scmp.lt.s32.totalorder %s1177_s27, 2  ;;  %p1464_p3 = scmp.eq.s32.totalorder %s1249_s28, 1 }
  0x3b   : > { %s1318_s17 = scalar_select %p30_p4, %s1173_s26, %s32_s12  }
  0x3c   : > { %p41_p5 = por %p40_p12, %p39_p6  ;;  %p1322_p10 = por %p1464_p3, %p39_p6 }
  0x3d   : > { %s269_s21 = sand.u32 1, %s1173_s26   ;;  %s784_s22 = sshll.u32 %s1177_s27, 7 }
  0x3e   : > { %s1465_s20 = scalar_select %p1322_p10, 1, 0 }
  0x3f   : > { %s783_s16 = sshll.u32 %s269_s21, 3  ;;  %s1331_s23 = scalar_lea.hbm %s1444_s0, %s784_s22 }
  0x40   : > { %s273_s29 = scalar_lea.vmem [#allocation2], %s783_s16  ;;  %p1333_p11 = pnand %p931_p0, %p41_p5 }
  0x41   : > { %s280_s10 = sshll.u32 %s273_s29, 4  ;;  %s270_s13 = scalar_lea.sflag [#allocation3], %s269_s21  ;;  %s281_s10 = int_to_ptr.vmem [resolvable:$true] %s280_s10 }
  0x42   : > { %s1077_s15 = scalar_lea.hbm %s1331_s23, 128  ;;  %p1079_p1 = pneg %p1333_p11 }
  0x43   : > { %p1078_p7 = scmp.ne.s32.totalorder %s1331_s23, %s1077_s15  ;;  %s1082_s18 = scalar_lea.hbm %s1444_s0, 256 }
  0x44   : > { %p1083_p2 = scmp.lt.s32.totalorder %s1331_s23, %s1444_s0  ;;  %p1084_p4 = scmp.lt.s32.totalorder %s1082_s18, %s1077_s15 }
  0x45   : > { %p1080_p9 = pnand %p1079_p1, %p1078_p7 }
  0x46   : > { %p1085_p6 = por %p1084_p4, %p1083_p2 }
  0x47   : > { %p1081_p13 = pneg %p1080_p9 }
  0x49   : > { %p1086_p12 = pnand %p1085_p6, %p1081_p13 }
  0x4b   : > { %1089 = shalt.err (!%p1086_p12)
}
  0x4c   : > { %s1090_s29 = scalar_lea.vmem %s281_s10, 128  ;;  %s1184_s21 = smov [#allocation2]  }
  0x4d   : > { %p1091_p0 = scmp.ne.s32.totalorder %s281_s10, %s1090_s29  ;;  %s1095_s1 = sshll.u32 %s1184_s21, 4  ;;  %s1096_s1 = int_to_ptr.vmem [resolvable:$false] %s1095_s1 }
  0x4e   : > { %s1097_s3 = scalar_lea.vmem %s1096_s1, 256  ;;  %p1098_p7 = scmp.lt.s32.totalorder %s281_s10, %s1096_s1 }
  0x4f   : > { %p1093_p5 = pnand %p1091_p0, %p1079_p1  ;;  %p1099_p9 = scmp.lt.s32.totalorder %s1097_s3, %s1090_s29 }
  0x51   : > { %p1094_p3 = pneg %p1093_p5  ;;  %p1100_p10 = por %p1099_p9, %p1098_p7 }
  0x53   : > { %p1101_p8 = pnand %p1100_p10, %p1094_p3 }
  0x55   : > { %1104 = shalt.err (!%p1101_p8)
}
  0x56   : > { %923 = dma.hbm_to_vmem [thread:$0]  (!%p1333_p11), %s1331_s23, 128, %s281_s10, %s270_s13  }
  0x57   : > { %p1467_p13 = scmp.ne.s32.totalorder %s1460_s9, 0 }
  0x58   : > { %s1354_s15 = sand.u32 (!%p1467_p13), 1, %s1169_s25   ;;  %p1468_p10 = scmp.ne.s32.totalorder (!%p1467_p13), %s1458_s30, 0 }
  0x59   : > { %289 = sbr.rel (%p1467_p13) target bundleno = 1037 (0x40d), region = 48  ;;  %s786_s12 = sshll.u32 (!%p1467_p13), %s1354_s15, 3 }
  0x5a   : > { %s292_s1 = scalar_lea.sflag (!%p1467_p13), [#allocation3], %s1354_s15  ;;  %s295_s3 = scalar_lea.vmem (!%p1467_p13), [#allocation2], %s786_s12 }
  0x5e   : > { %1148 = dma.done.wait (%p1468_p10), %s292_s1, 128  }
  0x5f   : > { %1150 = vsyncadd (%p1468_p10), %s292_s1, 4294967168  ;;  %p1469_p8 = scmp.eq.s32.totalorder %s1249_s28, 0 }
  0x61   : > { %1152 = dma.done.wait (%p1469_p8), [#allocation6], 1536   ;;  %p1470_p11 = pmov %p1469_p8 }
  0x62   : > { %p1471_p1 = pmov %p1469_p8 }
  0x63   : > { %1154 = vsyncadd (%p1470_p11), [#allocation6], 4294965760 }
  0x64   : > { %1156 = dma.done.wait (%p1471_p1), [#allocation9], 1024   ;;  %p1472_p2 = pmov %p1471_p1 }
  0x65   : > { %v1185_v0 = vmov 0.0   ;;  %vm1186_vm0 = vmmov 0   ;;  %v975_v1 = vld [vmem:[#allocation5 + $0x18] sm:$0xff]   ;;  %v976_v2 = vld [vmem:[#allocation5 + $0x10] sm:$0xff]   ;;  %v977_v4 = vld [vmem:[#allocation5 + $0x8] sm:$0xff]   ;;  %vm380_vm1 = vcmask 523264  }
  0x66   : > { %1158 = vsyncadd (%p1472_p2), [#allocation9], 4294966272  ;;  %842 = vmatprep.subr.bf16.mxu0 %v1185_v0  ;;  %850 = vmatprep.mubr.msk.bf16.mxu0 %vm1186_vm0, %v1185_v0  ;;  %v979_v3 = vld [vmem:[#allocation7 + $0x38] sm:$0xff]   ;;  %v980_v5 = vld [vmem:[#allocation7 + $0x30] sm:$0xff]   ;;  %s816_s22 = sshll.u32 %s1249_s28, 7  ;;  %s337_s18 = scalar_lea.vmem [#allocation10], %s786_s12 }
  0x67   : > { %854 = vmatprep.subr.bf16.mxu1 %v1185_v0  ;;  %870 = vmatprep.mubr.msk.bf16.mxu1 %vm1186_vm0, %v1185_v0  ;;  %v978_v6 = vld [vmem:[#allocation5] sm:$0xff]   ;;  %v339_v7 = vld [vmem:[%s295_s3] sm:$0xff]  ;;  %v981_v8 = vld [vmem:[#allocation7 + $0x28] sm:$0xff]   ;;  %s678_s19 = sshll.u32 %s337_s18, 4  ;;  %s676_s21 = scalar_lea.hbm %s1451_s7, %s816_s22  ;;  %s679_s19 = int_to_ptr.vmem [resolvable:$true] %s678_s19 }
  0x68   : > { %843 = vmatpush3.bf16.msra.mxu0 %v975_v1  ;;  %855 = vmatpush3.bf16.msra.mxu1 %v979_v3  ;;  %v340_v9 = vpack.c.bf16 %v339_v7, %v339_v7  ;;  %v982_v10 = vld [vmem:[#allocation7 + $0x20] sm:$0xff]   ;;  %v983_v11 = vld [vmem:[#allocation7 + $0x18] sm:$0xff]   ;;  %v984_v12 = vld [vmem:[#allocation7 + $0x10] sm:$0xff]   ;;  %s665_s1 = scalar_lea.sflag [#allocation4], %s1354_s15  ;;  %s1105_s3 = scalar_lea.vmem %s679_s19, 128 }
  0x69   : > { %844 = vmatprep.subr.bf16.mxu0 %v1185_v0  ;;  %856 = vmatprep.subr.bf16.mxu1 %v1185_v0  ;;  %v985_v13 = vld [vmem:[#allocation7 + $0x8] sm:$0xff]   ;;  %v986_v14 = vld [vmem:[#allocation7] sm:$0xff]   ;;  %v987_v15 = vld [vmem:[#allocation8 + $0x38] sm:$0xff]   ;;  %p1106_p4 = scmp.ne.s32.totalorder %s679_s19, %s1105_s3  ;;  %p1473_p6 = scmp.ne.s32.totalorder %s1465_s20, 0 }
  0x6a   : > { %v988_v16 = vld [vmem:[#allocation8 + $0x30] sm:$0xff]   ;;  %v989_v17 = vld [vmem:[#allocation8 + $0x28] sm:$0xff]   ;;  %v990_v18 = vld [vmem:[#allocation8 + $0x20] sm:$0xff]   ;;  %s1187_s30 = smov [#allocation10]  }
  0x6b   : > { %v991_v19 = vld [vmem:[#allocation8 + $0x18] sm:$0xff]   ;;  %v992_v20 = vld [vmem:[#allocation8 + $0x10] sm:$0xff]   ;;  %v993_v30 = vld [vmem:[#allocation8 + $0x8] sm:$0xff]   ;;  %p1107_p12 = pnand %p1106_p4, %p1473_p6  ;;  %s1109_s9 = sshll.u32 %s1187_s30, 4  ;;  %s1110_s9 = int_to_ptr.vmem [resolvable:$false] %s1109_s9 }
  0x6c   : > { %845 = vmatpush3.bf16.msra.mxu0 %v976_v2  ;;  %857 = vmatpush3.bf16.msra.mxu1 %v980_v5  ;;  %v791_v21 = vld [vmem:[%s1446_s2] ss:$0 sm:$0xff]  ;;  %v994_v31 = vld [vmem:[#allocation8] sm:$0xff]   ;;  %s1111_s28 = scalar_lea.vmem %s1110_s9, 256  ;;  %p1112_p5 = scmp.lt.s32.totalorder %s679_s19, %s1110_s9 }
  0x6d   : > { %846 = vmatprep.subr.bf16.mxu0 %v1185_v0  ;;  %858 = vmatprep.subr.bf16.mxu1 %v1185_v0  ;;  %v797_v32 = vld [vmem:[%s1448_s4] ss:$0 sm:$0xff]  ;;  %p1108_p0 = pneg %p1107_p12  ;;  %p1113_p3 = scmp.lt.s32.totalorder %s1111_s28, %s1105_s3 }
  0x6e   : > { %v806_v41 = vld [vmem:[%s1450_s6] ss:$0 sm:$0xff] }
  0x6f   : > { %p1114_p7 = por %p1113_p3, %p1112_p5 }
  0x70   : > { %847 = vmatpush3.bf16.msra.mxu0 %v977_v4  ;;  %859 = vmatpush3.bf16.msra.mxu1 %v981_v8 }
  0x71   : > { %848 = vmatprep.subr.bf16.mxu0 %v1185_v0  ;;  %860 = vmatprep.subr.bf16.mxu1 %v1185_v0  ;;  %p1115_p9 = pnand %p1114_p7, %p1108_p0 }
  0x74   : > { %849 = vmatpush3.bf16.msra.mxu0 %v978_v6  ;;  %861 = vmatpush3.bf16.msra.mxu1 %v982_v10 }
  0x75   : > { %874 = vmatprep.subr.bf16.mxu0 %v1185_v0  ;;  %862 = vmatprep.subr.bf16.mxu1 %v1185_v0 }
  0x77   : > { %851 = vmatmul.mubr.msk.bf16.vlgmr.msra.gmra.mxu0 %vm380_vm1, %v340_v9 }
  0x78   : > { %890 = vmatprep.mubr.msk.bf16.mxu0 %vm1186_vm0, %v1185_v0  ;;  %863 = vmatpush3.bf16.msra.mxu1 %v983_v11 }
  0x79   : > { %864 = vmatprep.subr.bf16.mxu1 %v1185_v0  ;;  %875 = vmatpush3.bf16.msra.mxu0 %v987_v15 }
  0x7a   : > { %876 = vmatprep.subr.bf16.mxu0 %v1185_v0 }
  0x7c   : > { %865 = vmatpush3.bf16.msra.mxu1 %v984_v12 }
  0x7d   : > { %866 = vmatprep.subr.bf16.mxu1 %v1185_v0  ;;  %877 = vmatpush3.bf16.msra.mxu0 %v988_v16 }
  0x7e   : > { %878 = vmatprep.subr.bf16.mxu0 %v1185_v0 }
  0x80   : > { %867 = vmatpush3.bf16.msra.mxu1 %v985_v13 }
  0x81   : > { %868 = vmatprep.subr.bf16.mxu1 %v1185_v0  ;;  %879 = vmatpush3.bf16.msra.mxu0 %v989_v17 }
  0x82   : > { %880 = vmatprep.subr.bf16.mxu0 %v1185_v0 }
  0x84   : > { %869 = vmatpush3.bf16.msra.mxu1 %v986_v14 }
  0x85   : > { %881 = vmatpush3.bf16.msra.mxu0 %v990_v18 }
  0x86   : > { %882 = vmatprep.subr.bf16.mxu0 %v1185_v0 }
  0x89   : > { %883 = vmatpush3.bf16.msra.mxu0 %v991_v19 }
  0x8a   : > { %884 = vmatprep.subr.bf16.mxu0 %v1185_v0 }
  0x8d   : > { %885 = vmatpush3.bf16.msra.mxu0 %v992_v20 }
  0x8e   : > { %886 = vmatprep.subr.bf16.mxu0 %v1185_v0 }
  0x91   : > { %887 = vmatpush3.bf16.msra.mxu0 %v993_v30 }
  0x92   : > { %888 = vmatprep.subr.bf16.mxu0 %v1185_v0 }
  0x95   : > { %889 = vmatpush3.bf16.msra.mxu0 %v994_v31 }
 0x137   : > { %v418_v22 = vpop.f32.mrf.mxu0 }
 0x138   : > { %v419_v23 = vadd.f32 %v791_v21, %v418_v22 }
 0x139   : > { %v852_v24 = vpop.f32.mrf.mxu0 }
 0x13a   : > { %vm424_vm2 = vcmp.ge.f32.partialorder %v419_v23, 0.0  ;;  %v425_v25 = vmul.f32 0.01, %v419_v23 }
 0x13b   : > { %v421_v26 = vpop.f32.mrf.mxu0 }
 0x13c   : > { %v426_v27 = vsel %vm424_vm2, %v419_v23, %v425_v25 }
 0x13d   : > { %v853_v28 = vpop.f32.mrf.mxu0  ;;  %v427_v29 = vpack.c.bf16 %v426_v27, %v426_v27 }
 0x13f   : > { %871 = vmatmul.mubr.bf16.vlgmr.msra.gmra.mxu1 %v427_v29 }
 0x1ff   : > { %v533_v33 = vpop.f32.mrf.mxu1 }
 0x200   : > { %v534_v34 = vadd.f32 %v797_v32, %v533_v33 }
 0x201   : > { %v872_v35 = vpop.f32.mrf.mxu1 }
 0x202   : > { %vm539_vm3 = vcmp.ge.f32.partialorder %v534_v34, 0.0  ;;  %v540_v36 = vmul.f32 0.01, %v534_v34 }
 0x203   : > { %v536_v37 = vpop.f32.mrf.mxu1 }
 0x204   : > { %v541_v38 = vsel %vm539_vm3, %v534_v34, %v540_v36 }
 0x205   : > { %v542_v39 = vpack.c.bf16 %v541_v38, %v541_v38  ;;  %v873_v40 = vpop.f32.mrf.mxu1 }
 0x207   : > { %891 = vmatmul.mubr.bf16.vlgmr.msra.gmra.mxu0 %v542_v39 }
 0x2c7   : > { %v648_v42 = vpop.f32.mrf.mxu0 }
 0x2c8   : > { %v649_v43 = vadd.f32 %v806_v41, %v648_v42 }
 0x2c9   : > { %v892_v44 = vpop.f32.mrf.mxu0 }
 0x2ca   : > { %654 = vmax.xlane.f32.xlu0 %v649_v43 }
 0x2cb   : > { %v651_v45 = vpop.f32.mrf.mxu0 }
 0x2cd   : > { %v893_v46 = vpop.f32.mrf.mxu0 }
 0x353   : > { %v655_v47 = vpop.xlane.xlu0 %654 }
 0x354   : > { %v656_v48 = vsub.f32 %v649_v43, %v655_v47 }
 0x356   : > { %v657_v49 = vmul.f32 1.442695, %v656_v48 }
 0x358   : > { %995 = vpow2.f32 %v657_v49 }
 0x365   : > { %v996_v50 = vpop.eup %995 }
 0x366   : > { %659 = vadd.xlane.f32.xlu0 %v996_v50 }
 0x3ef   : > { %v660_v51 = vpop.xlane.xlu0 %659 }
 0x3f0   : > { %997 = vrcp.f32 %v660_v51 }
 0x3fd   : > { %v998_v52 = vpop.eup %997 }
 0x3fe   : > { %v662_v53 = vmul.f32 %v998_v52, %v996_v50 }
 0x400   : > { %663 = vst [vmem:[%s337_s18] sm:$0xff] %v662_v53 }
 0x401   : > { %1118 = shalt.err (!%p1115_p9)
}
 0x402   : > { %s1119_s12 = scalar_lea.hbm %s676_s21, 128  ;;  %s1123_s10 = scalar_lea.hbm %s1451_s7, 256 }
 0x403   : > { %p1120_p13 = scmp.ne.s32.totalorder %s676_s21, %s1119_s12  ;;  %p1124_p11 = scmp.lt.s32.totalorder %s676_s21, %s1451_s7 }
 0x404   : > { %p1125_p1 = scmp.lt.s32.totalorder %s1123_s10, %s1119_s12 }
 0x405   : > { %p1121_p10 = pnand %p1120_p13, %p1473_p6 }
 0x406   : > { %p1126_p2 = por %p1125_p1, %p1124_p11 }
 0x407   : > { %p1122_p8 = pneg %p1121_p10 }
 0x409   : > { %p1127_p4 = pnand %p1126_p2, %p1122_p8 }
 0x40b   : > { %1130 = shalt.err (!%p1127_p4)
}
 0x40c   : > { %908 = dma.vmem_to_hbm [thread:$0]  (%p1473_p6), %s679_s19, 128, %s676_s21, %s665_s1  }
 0x40d PF: > { %s690_s22 = sand.u32 1, %s1165_s24   ;;  %p1474_p12 = scmp.ne.s32.totalorder %s1459_s8, 0 }
 0x40e   : > { %p1475_p0 = scmp.ge.s32.totalorder %s1177_s27, 2  ;;  %s691_s18 = scalar_lea.sflag [#allocation4], %s690_s22 }
 0x410   : > { %p925_p5 = pnand %p1475_p0, %p1474_p12 }
 0x412   : > { %p926_p3 = pneg %p925_p5 }
 0x414   : > { %1160 = dma.done.wait (%p926_p3), %s691_s18, 128  }
 0x415   : > { %1162 = vsyncadd (%p926_p3), %s691_s18, 4294967168  ;;  %p22_p7 = scmp.ge.s32.totalorder %s1308_s14, 4   ;;  %s1476_s24 = smov %s1169_s25 }
 0x416   : > { %s1477_s25 = smov %s1173_s26  ;;  %s1478_s26 = smov %s1318_s17 }
 0x417   : > { %s1479_s27 = smov %s1308_s14  ;;  %24 = sbr.rel (!%p22_p7) target bundleno = 10 (0xa), region = 105 }
 0x41c   :  { %696 = vsyncpa [#allocation3], 1 }
 0x41d   :  { %698 = vsyncpa [#allocation3 + $0x1], 1 }
 0x41e   :  { %699 = vsyncpa [#allocation6], 1 }
 0x41f   :  { %700 = vsyncpa [#allocation9], 1 }
 0x420   :  { %701 = vsyncpa [#allocation4], 1 }
 0x421   :  { %703 = vsyncpa [#allocation4 + $0x1], 1 }

</bundles_post_ra>
